<compile_context>
chip_gen: v7x
topology: tpu7x:2x2x1
jax: 0.10.0
libtpu: 0.0.40
codegen_flags: <defaults>
</compile_context>

<pallas_src>
import jax
import jax.numpy as jnp
from jax.experimental import pallas as pl
from jax.experimental.pallas import tpu as pltpu

INPUT_SIZE = 1
HIDDEN_SIZE = 50
OUTPUT_SIZE = 1

LANES = 128              # vreg lane width (last dim must be lane-dense)
SUBLANES = 8             # f32 sublane tiling
MAX_BLOCK_ROWS = 4096    # (4096,128) f32 tile = 2 MiB; 2 in + 2 out bufs = 8 MiB
                         # -> fits v5e's 16 MiB default scoped VMEM, v6e/v7x too.
MIN_PALLAS_BATCH = 8192  # below this, launch/grid overhead dominates -> pure JAX


def affine_kernel(wb_ref, x_ref, o_ref):
    # Fully fused collapsed 1->50->1 MLP forward: out = x * w_eff + b_eff.
    # wb_ref = (2,) f32 SMEM array [w_eff, b_eff], resident across all grid
    # steps (no per-step weight DMA).  Upcast + downcast happen in-kernel so
    # the wrapper never touches the data (pure HBM-streaming VPU FMA).
    w = wb_ref[0]
    b = wb_ref[1]
    o_ref[...] = (x_ref[...].astype(jnp.float32) * w + b).astype(o_ref.dtype)


def _tile_rows(rows, block_rows):
    """Largest multiple-of-8 row tile <= block_rows, aiming for >= 2 grid steps
    so the batch axis can shard across v7x's two TensorCores."""
    if rows <= SUBLANES:
        return rows                      # full-extent block (always legal)
    half = -(-rows // 2)                 # ceil(rows / 2)
    tb = min(block_rows, half)
    return max(SUBLANES, (tb // SUBLANES) * SUBLANES)


def _affine_pallas(wb, x2d, tb):
    rows = x2d.shape[0]
    return pl.pallas_call(
        affine_kernel,
        out_shape=jax.ShapeDtypeStruct((rows, LANES), x2d.dtype),
        grid=(pl.cdiv(rows, tb),),
        in_specs=[
            pl.BlockSpec(memory_space=pltpu.MemorySpace.SMEM),  # [w_eff, b_eff]
            pl.BlockSpec((tb, LANES), lambda i: (i, 0)),        # streamed x tile
        ],
        out_specs=pl.BlockSpec((tb, LANES), lambda i: (i, 0)),
        compiler_params=pltpu.CompilerParams(
            # Batch tiles are independent -> shard across v7x's 2 TensorCores;
            # harmless (single TC) on v5e/v6e.
            dimension_semantics=("parallel",),
        ),
    )(wb, x2d)


def mlp_forward(x, w1, b1, w2, b2, *, block_rows=MAX_BLOCK_ROWS,
                min_pallas_batch=MIN_PALLAS_BATCH):
    """Forward of Linear(1,50) -> Linear(50,1) with PyTorch weight layout:
       w1: (HIDDEN_SIZE, INPUT_SIZE), b1: (HIDDEN_SIZE,)
       w2: (OUTPUT_SIZE, HIDDEN_SIZE), b2: (OUTPUT_SIZE,)
       x : (B, INPUT_SIZE)
    Computation is done in f32 and cast back to x.dtype.
    """
    assert x.ndim == 2 and x.shape[1] == INPUT_SIZE == 1
    B = x.shape[0]
    n = B * INPUT_SIZE

    # Collapse the two linear layers (O(hidden) flops, once, in the wrapper).
    w_eff = (w2 @ w1).reshape(()).astype(jnp.float32)          # scalar weight
    b_eff = (b1 @ w2.T + b2).reshape(()).astype(jnp.float32)   # scalar bias

    # Tiny batches: fixed kernel/grid-step overhead dominates and there is no
    # HBM bandwidth to save -- let XLA fuse the scalar FMA directly.
    if B < min_pallas_batch:
        y = x.astype(jnp.float32) * w_eff + b_eff
        return y.astype(x.dtype)

    wb = jnp.stack([w_eff, b_eff])                             # (2,) SMEM scalars

    if n % LANES == 0:
        # Common case: pure bitcast reshapes -> zero extra HBM passes.
        rows = n // LANES
        x2d = x.reshape(rows, LANES)                           # free (contiguous)
        out2d = _affine_pallas(wb, x2d, _tile_rows(rows, block_rows))
        return out2d.reshape(B, OUTPUT_SIZE)                   # free (contiguous)

    # Ragged batch: pad the flat view up to whole 128-lane rows.
    # TODO(synk): a masked in-kernel store for the final tile would remove this
    # extra pad+slice pass; kept simple since large ragged batches are uncommon.
    rows = pl.cdiv(n, LANES)
    total = rows * LANES
    x2d = jnp.pad(x.reshape(-1), (0, total - n)).reshape(rows, LANES)
    out2d = _affine_pallas(wb, x2d, _tile_rows(rows, block_rows))
    return out2d.reshape(-1)[:n].reshape(B, OUTPUT_SIZE)


def init_params(key):
    """nn.Linear default init: U(-1/sqrt(fan_in), 1/sqrt(fan_in))."""
    k1, k2, k3, k4 = jax.random.split(key, 4)
    bound1 = 1.0 / (INPUT_SIZE ** 0.5)
    bound2 = 1.0 / (HIDDEN_SIZE ** 0.5)
    w1 = jax.random.uniform(k1, (HIDDEN_SIZE, INPUT_SIZE), jnp.float32,
                            minval=-bound1, maxval=bound1)
    b1 = jax.random.uniform(k2, (HIDDEN_SIZE,), jnp.float32,
                            minval=-bound1, maxval=bound1)
    w2 = jax.random.uniform(k3, (OUTPUT_SIZE, HIDDEN_SIZE), jnp.float32,
                            minval=-bound2, maxval=bound2)
    b2 = jax.random.uniform(k4, (OUTPUT_SIZE,), jnp.float32,
                            minval=-bound2, maxval=bound2)
    return w1, b1, w2, b2


if __name__ == "__main__":
    key = jax.random.PRNGKey(0)
    k_param, k1, k2, k3 = jax.random.split(key, 4)
    w1, b1, w2, b2 = init_params(k_param)

    def reference(x):
        # Pure-JAX reference matching the PyTorch forward exactly.
        return (x @ w1.T + b1) @ w2.T + b2

    # 1) Pallas path, lane-aligned batch (zero-copy wrapper), >= 2 grid steps.
    x_a = jax.random.normal(k1, (2048, INPUT_SIZE), jnp.float32)
    out_a = jax.block_until_ready(
        mlp_forward(x_a, w1, b1, w2, b2, min_pallas_batch=0))
    assert out_a.shape == (2048, OUTPUT_SIZE)
    assert jnp.allclose(out_a, reference(x_a), atol=1e-5, rtol=1e-5)

    # 2) Pallas path, ragged (non-multiple-of-128) batch -> padded fallback.
    x_b = jax.random.normal(k2, (300, INPUT_SIZE), jnp.float32)
    out_b = jax.block_until_ready(
        mlp_forward(x_b, w1, b1, w2, b2, min_pallas_batch=0))
    assert out_b.shape == (300, OUTPUT_SIZE)
    assert jnp.allclose(out_b, reference(x_b), atol=1e-5, rtol=1e-5)

    # 3) Default dispatch: tiny batch routes to the fused pure-JAX fast path.
    x_c = jax.random.normal(k3, (8, INPUT_SIZE), jnp.float32)
    out_c = jax.block_until_ready(mlp_forward(x_c, w1, b1, w2, b2))
    assert out_c.shape == (8, OUTPUT_SIZE)
    assert jnp.allclose(out_c, reference(x_c), atol=1e-5, rtol=1e-5)

    print("KERNEL_OK")
</pallas_src>

<mosaic_0001>
module attributes {stable_mosaic.version = 11 : i64} {
  func.func @affine_kernel(%arg0: i32, %arg1: memref<2xf32, #tpu.memory_space<smem>>, %arg2: memref<8x128xf32, #tpu.memory_space<vmem>>, %arg3: memref<8x128xf32, #tpu.memory_space<vmem>>) attributes {dimension_semantics = [#tpu.dimension_semantics<parallel>], iteration_bounds = array<i64: 2>, scalar_prefetch = 0 : i64, scratch_operands = 0 : i64, tpu.core_type = #tpu.core_type<tc>, window_params = [{transform_indices = @transform_0, window_bounds = array<i64: 2>}, {transform_indices = @transform_1, window_bounds = array<i64: 8, 128>}, {transform_indices = @transform_2, window_bounds = array<i64: 8, 128>}]} {
    %c0 = arith.constant 0 : index
    %0 = memref.load %arg1[%c0] : memref<2xf32, #tpu.memory_space<smem>>
    %c1 = arith.constant 1 : index
    %1 = memref.load %arg1[%c1] : memref<2xf32, #tpu.memory_space<smem>>
    %c0_0 = arith.constant 0 : index
    %c0_1 = arith.constant 0 : index
    %2 = vector.load %arg2[%c0_0, %c0_1] : memref<8x128xf32, #tpu.memory_space<vmem>>, vector<8x128xf32>
    %3 = vector.broadcast %0 : f32 to vector<8x128xf32>
    %4 = arith.mulf %2, %3 : vector<8x128xf32>
    %5 = vector.broadcast %1 : f32 to vector<8x128xf32>
    %6 = arith.addf %4, %5 : vector<8x128xf32>
    %c0_2 = arith.constant 0 : index
    %c0_3 = arith.constant 0 : index
    %7 = vector.load %arg3[%c0_2, %c0_3] : memref<8x128xf32, #tpu.memory_space<vmem>>, vector<8x128xf32>
    tpu.vector_store %arg3[%c0_2, %c0_3], %6 {strides = array<i32>} : memref<8x128xf32, #tpu.memory_space<vmem>>, vector<8x128xf32>,
    return
  }
  func.func @transform_0(%arg0: i32) -> i32 {
    %c0_i32 = arith.constant 0 : i32
    %c0_i32_0 = arith.constant 0 : i32
    return %c0_i32 : i32
  }
  func.func @transform_1(%arg0: i32) -> (i32, i32) {
    %c0_i32 = arith.constant 0 : i32
    %c0_i32_0 = arith.constant 0 : i32
    return %arg0, %c0_i32 : i32, i32
  }
  func.func @transform_2(%arg0: i32) -> (i32, i32) {
    %c0_i32 = arith.constant 0 : i32
    %c0_i32_0 = arith.constant 0 : i32
    return %arg0, %c0_i32 : i32, i32
  }
}

</mosaic_0001>

<bundles_post_ra>
// kernel: tpu_custom_call.1
= control target key start
LH: loop header
LB: loop body
LE: loop exit
PB: predicated region body
PF: predicated region fallthrough
CT: control target
= control target key end

     0   :  { %7 = vsyncpa [#allocation5], 0  ;;  %s685_s0 = inlined_call_operand.hbm [shape: f32[2], index: 0, kind: input, shape index: {}]   ;;  %s686_s1 = inlined_call_operand.hbm [shape: f32[16,128], index: 1, kind: input, shape index: {}]   ;;  %s687_s2 = inlined_call_operand.hbm [shape: f32[16,128], index: 2, kind: output, shape index: {}]  }
   0x1   :  { %8 = vsyncpa [#allocation3], 0 }
   0x2   :  { %10 = vsyncpa [#allocation3 + $0x1], 0 }
   0x3   :  { %11 = vsyncpa [#allocation4], 0 }
   0x4   :  { %13 = vsyncpa [#allocation4 + $0x1], 0  ;;  %s480_s9 = smov 0   ;;  %s482_s10 = smov 0  }
   0x5   :  { %s484_s11 = smov 0   ;;  %s486_s12 = smov 0  }
   0x6 LB: > { %s501_s13 = sadd.s32 4294967295, %s460_s12   ;;  %s275_s14 = sadd.s32 4294967294, %s460_s12   ;;  %s460_s12 = sphi %s486_s12, %s708_s12   ;;  %s456_s11 = sphi %s484_s11, %s707_s11   ;;  %s452_s10 = sphi %s482_s10, %s706_s10   ;;  %s448_s9 = sphi %s480_s9, %s705_s9  }
   0x7   : > { %p60_p0 = scmp.ne.s32.totalorder %s452_s10, %s448_s9  ;;  %p688_p1 = scmp.eq.s32.totalorder %s501_s13, 0 }
   0x8   : > { %p90_p3 = scmp.eq.s32.totalorder %s275_s14, 1  ;;  %p276_p5 = scmp.ge.s32.totalorder %s460_s12, 1 }
   0x9   : > { %p510_p4 = por %p688_p1, %p60_p0  ;;  %p97_p7 = scmp.lt.s32.totalorder %s460_s12, 3 }
   0xa   : > { %p515_p6 = por %p90_p3, %p60_p0  ;;  %s526_s18 = sadd.s32 1, %s460_s12  }
   0xb   : > { %s691_s15 = scalar_select %p510_p4, 1, 0 }
   0xc   : > { %s692_s16 = scalar_select %p515_p6, 1, 0 }
   0xd   : > { %p520_p8 = pnand %p276_p5, %p97_p7  ;;  %s44_s19 = ssub.s32 %s460_s12, %s526_s18 }
   0xe   : > { %s47_s20 = sadd.s32 1, %s456_s11  ;;  %p539_p12 = scmp.eq.s32.totalorder %s44_s19, 0 }
   0xf   : > { %p298_p10 = pneg %p520_p8  ;;  %p54_p13 = scmp.ne.s32.totalorder %s456_s11, %s452_s10 }
  0x10   : > { %p55_p0 = scmp.eq.s32.totalorder %s460_s12, 0  ;;  %p311_p3 = scmp.lt.s32.totalorder %s460_s12, 2 }
  0x11   : > { %p535_p11 = pnand %p298_p10, %p688_p1  ;;  %s347_s25 = scalar_lea.hbm %s685_s0, 16 }
  0x12   : > { %p348_p5 = scmp.ne.s32.totalorder %s685_s0, %s347_s25  ;;  %p354_p1 = scmp.lt.u32.totalorder %s347_s25, %s685_s0 }
  0x13   : > { %p349_p7 = pneg %p535_p11 }
  0x15   : > { %p350_p10 = pnand %p349_p7, %p348_p5 }
  0x17   : > { %p351_p9 = pneg %p350_p10 }
  0x19   : > { %p356_p2 = pnand %p354_p1, %p351_p9 }
  0x1b   : > { %359 = shalt.err (!%p356_p2)
}
  0x1c   : > { %s462_s30 = smov [#allocation2]   ;;  %p56_p1 = por %p55_p0, %p54_p13 }
  0x1d   : > { %301 = dma.hbm_to_smem (!%p535_p11), %s685_s0, 16, %s462_s30, [#allocation5]  }
  0x1e   : > { %s566_s5 = scalar_select %p539_p12, %s456_s11, %s47_s20  }
  0x1f   : > { %p696_p2 = scmp.eq.s32.totalorder %s501_s13, 1  ;;  %s119_s7 = sand.u32 1, %s456_s11  }
  0x20   : > { %s280_s8 = sshll.u32 %s460_s12, 7  ;;  %s279_s14 = sshll.u32 %s119_s7, 3 }
  0x21   : > { %p578_p9 = por %p696_p2, %p54_p13  ;;  %s587_s23 = scalar_lea.hbm %s686_s1, %s280_s8 }
  0x22   : > { %s123_s20 = scalar_lea.vmem [#allocation6], %s279_s14  ;;  %p591_p11 = pnand %p311_p3, %p56_p1 }
  0x23   : > { %s697_s6 = scalar_select %p578_p9, 1, 0 }
  0x24   : > { %s130_s22 = sshll.u32 %s123_s20, 4  ;;  %s120_s25 = scalar_lea.sflag [#allocation3], %s119_s7  ;;  %s595_s22 = int_to_ptr.vmem [resolvable:$true] %s130_s22 }
  0x25   : > { %s360_s26 = scalar_lea.hbm %s587_s23, 128  ;;  %p362_p13 = pneg %p591_p11 }
  0x26   : > { %p361_p12 = scmp.ne.s32.totalorder %s587_s23, %s360_s26  ;;  %s365_s29 = scalar_lea.hbm %s686_s1, 256 }
  0x27   : > { %p366_p3 = scmp.lt.u32.totalorder %s587_s23, %s686_s1  ;;  %p367_p7 = scmp.lt.u32.totalorder %s365_s29, %s360_s26 }
  0x28   : > { %p363_p0 = pnand %p362_p13, %p361_p12  ;;  %p369_p1 = scmp.lt.u32.totalorder %s360_s26, %s587_s23 }
  0x29   : > { %p368_p10 = por %p367_p7, %p366_p3 }
  0x2a   : > { %p364_p5 = pneg %p363_p0 }
  0x2b   : > { %p370_p2 = por %p369_p1, %p368_p10 }
  0x2d   : > { %p371_p6 = pnand %p370_p2, %p364_p5 }
  0x2f   : > { %374 = shalt.err (!%p371_p6)
}
  0x30   : > { %s375_s4 = scalar_lea.vmem %s595_s22, 128  ;;  %s463_s7 = smov [#allocation6]  }
  0x31   : > { %p376_p12 = scmp.ne.s32.totalorder %s595_s22, %s375_s4  ;;  %s380_s8 = sshll.u32 %s463_s7, 4  ;;  %s381_s8 = int_to_ptr.vmem [resolvable:$false] %s380_s8 }
  0x32   : > { %s382_s14 = scalar_lea.vmem %s381_s8, 256  ;;  %p383_p4 = scmp.lt.s32.totalorder %s595_s22, %s381_s8 }
  0x33   : > { %p378_p0 = pnand %p376_p12, %p362_p13  ;;  %p384_p3 = scmp.lt.s32.totalorder %s382_s14, %s375_s4 }
  0x35   : > { %p379_p9 = pneg %p378_p0  ;;  %p385_p7 = por %p384_p3, %p383_p4 }
  0x37   : > { %p386_p10 = pnand %p385_p7, %p379_p9 }
  0x39   : > { %389 = shalt.err (!%p386_p10)
}
  0x3a   : > { %305 = dma.hbm_to_vmem [thread:$0]  (!%p591_p11), %s587_s23, 128, %s595_s22, %s120_s25  }
  0x3b   : > { %139 = sbr.rel (%p520_p8) target bundleno = 100 (0x64), region = 28  ;;  %p699_p6 = scmp.eq.s32.totalorder (!%p520_p8), %s501_s13, 0 }
  0x42   : > { %435 = dma.done.wait (%p699_p6), [#allocation5], 16   ;;  %p700_p13 = pmov %p699_p6 }
  0x43   : > { %s629_s19 = sand.u32 1, %s452_s10   ;;  %p701_p4 = scmp.ne.s32.totalorder %s691_s15, 0 }
  0x44   : > { %437 = vsyncadd (%p700_p13), [#allocation5], 4294967280  ;;  %s283_s21 = sshll.u32 %s629_s19, 3  ;;  %s146_s20 = scalar_lea.sflag [#allocation3], %s629_s19 }
  0x45   : > { %s149_s24 = scalar_lea.vmem [#allocation6], %s283_s21 }
  0x46   : > { %439 = dma.done.wait (%p701_p4), %s146_s20, 128  }
  0x47   : > { %441 = vsyncadd (%p701_p4), %s146_s20, 4294967168 }
  0x48   : > { %154 = sfence }
  0x49   : > { %s171_s17 = sld [smem:[#allocation2]]  ;;  %s285_s23 = sld [smem:[#allocation2 + $0x1]]  ;;  %v173_v0 = vld [vmem:[%s149_s24] sm:$0xff] }
  0x4a   : > { %s170_s22 = scalar_lea.vmem [#allocation7], %s283_s21  ;;  %s287_s26 = sshll.u32 %s501_s13, 7 }
  0x4b   : > { %s193_s25 = sshll.u32 %s170_s22, 4  ;;  %s643_s28 = scalar_lea.hbm %s687_s2, %s287_s26  ;;  %s638_s25 = int_to_ptr.vmem [resolvable:$true] %s193_s25 }
  0x4c   : > { %s180_s29 = scalar_lea.sflag [#allocation4], %s629_s19  ;;  %s390_s30 = scalar_lea.vmem %s638_s25, 128 }
  0x4d   : > { %p391_p8 = scmp.ne.s32.totalorder %s638_s25, %s390_s30  ;;  %p702_p9 = scmp.ne.s32.totalorder %s697_s6, 0 }
  0x4e   : > { %s464_s13 = smov [#allocation7]  }
  0x4f   : > { %v174_v1 = vstv %s171_s17  ;;  %v176_v3 = vstv %s285_s23  ;;  %p392_p11 = pnand %p391_p8, %p702_p9  ;;  %s394_s3 = sshll.u32 %s464_s13, 4  ;;  %s395_s3 = int_to_ptr.vmem [resolvable:$false] %s394_s3 }
  0x50   : > { %v175_v2 = vmul.f32 %v174_v1, %v173_v0  ;;  %s396_s4 = scalar_lea.vmem %s395_s3, 256  ;;  %p397_p1 = scmp.lt.s32.totalorder %s638_s25, %s395_s3 }
  0x51   : > { %p393_p5 = pneg %p392_p11  ;;  %p398_p2 = scmp.lt.s32.totalorder %s396_s4, %s390_s30 }
  0x52   : > { %v177_v4 = vadd.f32 %v176_v3, %v175_v2 }
  0x53   : > { %p399_p12 = por %p398_p2, %p397_p1 }
  0x54   : > { %178 = vst [vmem:[%s170_s22] sm:$0xff] %v177_v4 }
  0x55   : > { %p400_p0 = pnand %p399_p12, %p393_p5 }
  0x57   : > { %403 = shalt.err (!%p400_p0)
}
  0x58   : > { %s404_s7 = scalar_lea.hbm %s643_s28, 128  ;;  %s408_s19 = scalar_lea.hbm %s687_s2, 256 }
  0x59   : > { %p405_p3 = scmp.ne.s32.totalorder %s643_s28, %s404_s7  ;;  %p409_p6 = scmp.lt.u32.totalorder %s643_s28, %s687_s2 }
  0x5a   : > { %p410_p13 = scmp.lt.u32.totalorder %s408_s19, %s404_s7  ;;  %p412_p8 = scmp.lt.u32.totalorder %s404_s7, %s643_s28 }
  0x5b   : > { %p406_p7 = pnand %p405_p3, %p702_p9 }
  0x5c   : > { %p411_p4 = por %p410_p13, %p409_p6 }
  0x5d   : > { %p407_p10 = pneg %p406_p7 }
  0x5e   : > { %p413_p11 = por %p412_p8, %p411_p4 }
  0x60   : > { %p414_p5 = pnand %p413_p11, %p407_p10 }
  0x62   : > { %417 = shalt.err (!%p414_p5)
}
  0x63   : > { %296 = dma.vmem_to_hbm [thread:$0]  (%p702_p9), %s638_s25, 128, %s643_s28, %s180_s29  }
  0x64 PF: > { %s205_s24 = sand.u32 1, %s448_s9   ;;  %p703_p1 = scmp.ne.s32.totalorder %s692_s16, 0 }
  0x65   : > { %p704_p2 = scmp.ge.s32.totalorder %s460_s12, 2  ;;  %s206_s17 = scalar_lea.sflag [#allocation4], %s205_s24 }
  0x67   : > { %p307_p12 = pnand %p704_p2, %p703_p1 }
  0x69   : > { %443 = dma.done.wait (!%p307_p12), %s206_s17, 128  }
  0x6a   : > { %445 = vsyncadd (!%p307_p12), %s206_s17, 4294967168  ;;  %p16_p0 = scmp.ge.s32.totalorder %s526_s18, 4   ;;  %s705_s9 = smov %s452_s10 }
  0x6b   : > { %s706_s10 = smov %s456_s11  ;;  %s707_s11 = smov %s566_s5 }
  0x6c   : > { %s708_s12 = smov %s526_s18  ;;  %18 = sbr.rel (!%p16_p0) target bundleno = 6 (0x6), region = 78 }
  0x73   :  { %211 = vsyncpa [#allocation3], 1 }
  0x74   :  { %213 = vsyncpa [#allocation3 + $0x1], 1 }
  0x75   :  { %214 = vsyncpa [#allocation4], 1 }
  0x76   :  { %216 = vsyncpa [#allocation4 + $0x1], 1 }
  0x77   :  { %217 = vsyncpa [#allocation5], 1 }
  0x78   :  { %219 = vsyncpa [#allocation5 + $0x1], 1 }

</bundles_post_ra>
